<compile_context>
chip_gen: v7x
topology: tpu7x:2x2x1
jax: 0.10.0
libtpu: 0.0.40
codegen_flags: <defaults>
</compile_context>

<pallas_src>
import jax
import jax.numpy as jnp
from jax.experimental import pallas as pl
from jax.experimental.pallas import tpu as pltpu

_LANE = 128
_MAX_BLK_ROWS = 8192      # 8192 x 128 x 4B = 4 MiB/buffer -> <=16 MiB double-buffered in+out
_MIN_BLK_ROWS = 256       # 128 KiB f32 per block: DMA time >> per-step overhead
_TARGET_BLOCKS = 4        # aim for >=4 grid steps so v7x can shard across both TCs
_MIN_KERNEL_ELEMS = 16384 # below ~64 KiB f32, plain fused XLA beats kernel launch cost


def _dlw_kernel(w_ref, loss_ref, out_ref):
    # w_ref: SMEM f32[1] = [loss_weight]
    # loss_ref / out_ref: (blk_rows, 128) VMEM tiles.
    w = w_ref[0]
    # One exp per grid step on the otherwise-idle EUP slot; the per-element
    # path stays a single VPU multiply-add.
    inv_exp_w = jnp.exp(jnp.full((1, 1), -w, dtype=jnp.float32))
    x = loss_ref[...].astype(jnp.float32)
    out_ref[...] = (x * inv_exp_w + w).astype(out_ref.dtype)


def _dlw_reference(loss, w32):
    # Plain-JAX path (exact torch formula); used for tiny inputs and the
    # sub-128-element ragged tail.
    return loss / jnp.exp(w32) + w32


def _choose_block_rows(rows, in_itemsize):
    # Sublane packing multiple for the input dtype: f32 -> 8, bf16/f16 -> 16, 8-bit -> 32.
    sub = 8 * max(1, 4 // in_itemsize)
    rows_up = pl.cdiv(rows, sub) * sub
    target = max(pl.cdiv(rows, _TARGET_BLOCKS), _MIN_BLK_ROWS)
    target = pl.cdiv(target, sub) * sub
    return max(sub, min(_MAX_BLK_ROWS, target, rows_up))


def dynamic_loss_weighting(loss, loss_weight):
    """Exact equivalent of DynamicLossWeighting.forward(loss)."""
    orig_shape = loss.shape
    w32 = jnp.asarray(loss_weight, dtype=jnp.float32)
    # Match torch type promotion: loss (any float) op fp32 parameter -> promoted dtype.
    out_dtype = jnp.promote_types(loss.dtype, jnp.float32)

    flat = loss.reshape(-1)
    n = flat.shape[0]
    n_main = (n // _LANE) * _LANE

    # Small-size fallback: launch/pipeline overhead dominates tiny inputs.
    if n < _MIN_KERNEL_ELEMS or n_main == 0:
        return _dlw_reference(loss, w32).astype(out_dtype)

    x2d = flat[:n_main].reshape(-1, _LANE)          # lane-dense (rows, 128)
    rows = x2d.shape[0]
    in_itemsize = jnp.dtype(loss.dtype).itemsize
    blk_rows = _choose_block_rows(rows, in_itemsize)
    grid = (pl.cdiv(rows, blk_rows),)
    out_itemsize = jnp.dtype(out_dtype).itemsize

    out2d = pl.pallas_call(
        _dlw_kernel,
        out_shape=jax.ShapeDtypeStruct((rows, _LANE), out_dtype),
        grid=grid,
        in_specs=[
            pl.BlockSpec(memory_space=pltpu.SMEM),               # [loss_weight]
            pl.BlockSpec((blk_rows, _LANE), lambda i: (i, 0)),   # loss tile
        ],
        out_specs=pl.BlockSpec((blk_rows, _LANE), lambda i: (i, 0)),
        compiler_params=pltpu.CompilerParams(
            dimension_semantics=("parallel",),       # megacore split on v7x
            vmem_limit_bytes=32 * 1024 * 1024,       # headroom for 4 MiB blocks on all gens
        ),
        cost_estimate=pl.CostEstimate(
            flops=2 * rows * _LANE,
            transcendentals=grid[0],
            bytes_accessed=rows * _LANE * (in_itemsize + out_itemsize),
        ),
    )(w32.reshape(1), x2d)

    out_flat = out2d.reshape(-1)
    if n_main != n:
        # Ragged tail (< 128 elements): plain jnp instead of a full-array
        # pad + slice (which would double HBM traffic for misaligned sizes).
        tail = _dlw_reference(flat[n_main:], w32).astype(out_dtype)
        out_flat = jnp.concatenate([out_flat, tail])
    return out_flat.reshape(orig_shape)


if __name__ == "__main__":
    # Deterministic parameter init, matching nn.Parameter(torch.tensor(1.0)).
    init_val = 1.0
    loss_weight = jnp.float32(init_val)

    key = jax.random.PRNGKey(0)
    k1, k2, k3 = jax.random.split(key, 3)

    def check(loss):
        out = jax.block_until_ready(dynamic_loss_weighting(loss, loss_weight))
        ref = loss / jnp.exp(loss_weight) + loss_weight
        assert out.shape == loss.shape, (out.shape, loss.shape)
        assert out.dtype == ref.dtype, (out.dtype, ref.dtype)
        assert jnp.allclose(out.astype(jnp.float32), ref.astype(jnp.float32),
                            atol=1e-5, rtol=1e-5)

    # Pallas path: lane-aligned f32 loss tensor (grid of 4 blocks).
    check(jax.random.normal(k1, (2, 4, 128, 128), dtype=jnp.float32))
    # Pallas path with ragged tail (numel % 128 != 0).
    check(jax.random.normal(k2, (137, 129), dtype=jnp.float32))
    # Pallas path with bf16 input (f32-promoted output, 16-row sublane packing).
    check(jax.random.normal(k3, (2, 4, 128, 128), dtype=jnp.bfloat16))
    # Tiny input: plain-jnp fallback path (small shape from the original spec).
    check(jax.random.normal(key, (2, 4, 16, 16), dtype=jnp.float32))

    print("KERNEL_OK")
</pallas_src>

<mosaic_0001>
module attributes {stable_mosaic.version = 11 : i64} {
  func.func @_dlw_kernel(%arg0: i32, %arg1: memref<1xf32, #tpu.memory_space<smem>>, %arg2: memref<256x128xf32, #tpu.memory_space<vmem>>, %arg3: memref<256x128xf32, #tpu.memory_space<vmem>>) attributes {dimension_semantics = [#tpu.dimension_semantics<parallel>], iteration_bounds = array<i64: 4>, scalar_prefetch = 0 : i64, scratch_operands = 0 : i64, tpu.core_type = #tpu.core_type<tc>, window_params = [{transform_indices = @transform_0, window_bounds = array<i64: 1>}, {transform_indices = @transform_1, window_bounds = array<i64: 256, 128>}, {transform_indices = @transform_2, window_bounds = array<i64: 256, 128>}]} {
    %c0 = arith.constant 0 : index
    %0 = memref.load %arg1[%c0] : memref<1xf32, #tpu.memory_space<smem>>
    %cst = arith.constant 0.000000e+00 : f32
    %1 = arith.subf %cst, %0 : f32
    %2 = vector.broadcast %1 : f32 to vector<1x1xf32>
    %3 = math.exp %2 : vector<1x1xf32>
    %c0_0 = arith.constant 0 : index
    %c0_1 = arith.constant 0 : index
    %4 = vector.load %arg2[%c0_0, %c0_1] : memref<256x128xf32, #tpu.memory_space<vmem>>, vector<256x128xf32>
    %5 = vector.broadcast %3 : vector<1x1xf32> to vector<256x128xf32>
    %6 = arith.mulf %4, %5 : vector<256x128xf32>
    %7 = vector.broadcast %0 : f32 to vector<256x128xf32>
    %8 = arith.addf %6, %7 : vector<256x128xf32>
    %c0_2 = arith.constant 0 : index
    %c0_3 = arith.constant 0 : index
    %9 = vector.load %arg3[%c0_2, %c0_3] : memref<256x128xf32, #tpu.memory_space<vmem>>, vector<256x128xf32>
    tpu.vector_store %arg3[%c0_2, %c0_3], %8 {strides = array<i32>} : memref<256x128xf32, #tpu.memory_space<vmem>>, vector<256x128xf32>,
    return
  }
  func.func @transform_0(%arg0: i32) -> i32 {
    %c0_i32 = arith.constant 0 : i32
    %c0_i32_0 = arith.constant 0 : i32
    return %c0_i32 : i32
  }
  func.func @transform_1(%arg0: i32) -> (i32, i32) {
    %c0_i32 = arith.constant 0 : i32
    %c0_i32_0 = arith.constant 0 : i32
    return %arg0, %c0_i32 : i32, i32
  }
  func.func @transform_2(%arg0: i32) -> (i32, i32) {
    %c0_i32 = arith.constant 0 : i32
    %c0_i32_0 = arith.constant 0 : i32
    return %arg0, %c0_i32 : i32, i32
  }
}

</mosaic_0001>

<bundles_post_ra>
// kernel: tpu_custom_call.1
= control target key start
LH: loop header
LB: loop body
LE: loop exit
PB: predicated region body
PF: predicated region fallthrough
CT: control target
= control target key end

     0   :  { %s877_s0 = inlined_call_operand.<no memory space> [shape: f32[1], index: 0, kind: input, shape index: {}]   ;;  %s878_s1 = inlined_call_operand.hbm [shape: f32[1024,128], index: 1, kind: input, shape index: {}]   ;;  %s879_s2 = inlined_call_operand.hbm [shape: f32[1024,128], index: 2, kind: output, shape index: {}]  }
   0x1   :  { %7 = sst [smem:[#allocation2]] %s877_s0 }
   0x2   :  { %8 = vsyncpa [#allocation4], 0 }
   0x3   :  { %10 = vsyncpa [#allocation4 + $0x1], 0 }
   0x4   :  { %11 = vsyncpa [#allocation5], 0 }
   0x5   :  { %13 = vsyncpa [#allocation5 + $0x1], 0  ;;  %s576_s11 = smov 0   ;;  %s578_s12 = smov 0  }
   0x6   :  { %s580_s13 = smov 0   ;;  %s582_s14 = smov 0  }
   0x7 LB: > { %s597_s0 = sadd.s32 4294967295, %s550_s14   ;;  %s386_s15 = sadd.s32 4294967294, %s550_s14   ;;  %s550_s14 = sphi %s582_s14, %s891_s14   ;;  %s546_s13 = sphi %s580_s13, %s890_s13   ;;  %s542_s12 = sphi %s578_s12, %s889_s12   ;;  %s538_s11 = sphi %s576_s11, %s888_s11  }
   0x8   : > { %s601_s16 = sadd.s32 1, %s550_s14   ;;  %s47_s17 = sadd.s32 1, %s546_s13 }
   0x9   : > { %s44_s18 = ssub.s32 %s550_s14, %s601_s16  ;;  %p54_p0 = scmp.ne.s32.totalorder %s546_s13, %s542_s12 }
   0xa   : > { %p45_p1 = scmp.eq.s32.totalorder %s44_s18, 0  ;;  %p55_p2 = scmp.eq.s32.totalorder %s550_s14, 0 }
   0xb   : > { %p60_p3 = scmp.ne.s32.totalorder %s542_s12, %s538_s11  ;;  %p61_p4 = scmp.eq.s32.totalorder %s597_s0, 0 }
   0xc   : > { %s613_s19 = scalar_select %p45_p1, %s546_s13, %s47_s17  }
   0xd   : > { %p615_p5 = por %p55_p2, %p54_p0  ;;  %p619_p6 = por %p61_p4, %p60_p3 }
   0xe   : > { %p84_p7 = scmp.eq.s32.totalorder %s597_s0, 3  ;;  %p90_p8 = scmp.eq.s32.totalorder %s386_s15, 3 }
   0xf   : > { %p414_p9 = scmp.lt.s32.totalorder %s550_s14, 4  ;;  %s113_s24 = sand.u32 1, %s546_s13  }
  0x10   : > { %p625_p10 = por %p84_p7, %p54_p0  ;;  %p629_p11 = por %p90_p8, %p60_p3 }
  0x11   : > { %s400_s25 = sshll.u32 %s550_s14, 12  ;;  %s389_s26 = sshll.u32 %s113_s24, 8 }
  0x12   : > { %s883_s22 = scalar_select %p625_p10, 1, 0 }
  0x13   : > { %s884_s23 = scalar_select %p629_p11, 1, 0 }
  0x14   : > { %s638_s29 = scalar_lea.hbm %s878_s1, %s400_s25  ;;  %s117_s30 = scalar_lea.vmem [#allocation3], %s389_s26 }
  0x15   : > { %s124_s3 = sshll.u32 %s117_s30, 4  ;;  %p642_p12 = pnand %p414_p9, %p615_p5  ;;  %s646_s3 = int_to_ptr.vmem [resolvable:$true] %s124_s3 }
  0x16   : > { %s648_s5 = scalar_lea.sflag [#allocation4], %s113_s24  ;;  %s454_s6 = scalar_lea.hbm %s638_s29, 4096 }
  0x17   : > { %p455_p13 = scmp.ne.s32.totalorder %s638_s29, %s454_s6  ;;  %p456_p0 = pneg %p642_p12 }
  0x18   : > { %s459_s9 = scalar_lea.hbm %s878_s1, 16384  ;;  %p460_p3 = scmp.lt.u32.totalorder %s638_s29, %s878_s1 }
  0x19   : > { %p457_p1 = pnand %p456_p0, %p455_p13  ;;  %p461_p4 = scmp.lt.u32.totalorder %s459_s9, %s454_s6 }
  0x1a   : > { %p463_p7 = scmp.lt.u32.totalorder %s454_s6, %s638_s29 }
  0x1b   : > { %p458_p2 = pneg %p457_p1  ;;  %p462_p5 = por %p461_p4, %p460_p3 }
  0x1d   : > { %p464_p8 = por %p463_p7, %p462_p5 }
  0x1f   : > { %p465_p9 = pnand %p464_p8, %p458_p2 }
  0x21   : > { %468 = shalt.err (!%p465_p9)
}
  0x22   : > { %s469_s17 = scalar_lea.vmem %s646_s3, 4096  ;;  %s552_s18 = smov [#allocation3]  }
  0x23   : > { %p470_p13 = scmp.ne.s32.totalorder %s646_s3, %s469_s17  ;;  %s474_s20 = sshll.u32 %s552_s18, 4  ;;  %s475_s20 = int_to_ptr.vmem [resolvable:$false] %s474_s20 }
  0x24   : > { %s476_s24 = scalar_lea.vmem %s475_s20, 8192  ;;  %p477_p10 = scmp.lt.s32.totalorder %s646_s3, %s475_s20 }
  0x25   : > { %p472_p1 = pnand %p470_p13, %p456_p0  ;;  %p478_p3 = scmp.lt.s32.totalorder %s476_s24, %s469_s17 }
  0x27   : > { %p473_p11 = pneg %p472_p1  ;;  %p479_p4 = por %p478_p3, %p477_p10 }
  0x29   : > { %p480_p5 = pnand %p479_p4, %p473_p11 }
  0x2b   : > { %483 = shalt.err (!%p480_p5)
}
  0x2c   : > { %s553_s25 = smov 128   ;;  %s554_s26 = smov 8  }
  0x2d   : > { %409 = dma.hbm_to_vmem [thread:$0]  (!%p642_p12), %s638_s29, 4096, %s646_s3, %s648_s5, %s553_s25, %s553_s25, %s554_s26  }
  0x2e   : > { %p392_p0 = scmp.ge.s32.totalorder %s550_s14, 1  ;;  %p132_p2 = scmp.lt.s32.totalorder %s550_s14, 5 }
  0x30   : > { %p133_p7 = pnand %p392_p0, %p132_p2 }
  0x31   : > { %s679_s27 = sand.u32 (!%p133_p7), 1, %s542_s12  }
  0x32   : > { %136 = sbr.rel (%p133_p7) target bundleno = 116 (0x74), region = 28  ;;  %s393_s28 = sshll.u32 (!%p133_p7), %s679_s27, 8 }
  0x33   : > { %s139_s30 = scalar_lea.sflag (!%p133_p7), [#allocation4], %s679_s27  ;;  %s685_s6 = scalar_lea.vmem (!%p133_p7), [#allocation3], %s393_s28 }
  0x39   : > { %529 = dma.done.wait (%p619_p6), %s139_s30, 4096  }
  0x3a   : > { %531 = vsyncadd (%p619_p6), %s139_s30, 4294963200  ;;  %s165_s29 = sld [smem:[#allocation2]]  ;;  %v170_v2 = vld [vmem:[%s685_s6] sm:$0xff]  ;;  %v171_v3 = vld [vmem:[%s685_s6 + $0x8] sm:$0xff]  ;;  %s729_s21 = scalar_lea.vmem [#allocation6], %s393_s28 }
  0x3b   : > { %v172_v4 = vld [vmem:[%s685_s6 + $0x10] sm:$0xff]  ;;  %v173_v5 = vld [vmem:[%s685_s6 + $0x18] sm:$0xff]  ;;  %v174_v6 = vld [vmem:[%s685_s6 + $0x20] sm:$0xff]  ;;  %s401_s4 = sshll.u32 %s597_s0, 12  ;;  %s313_s5 = sshll.u32 %s729_s21, 4  ;;  %s822_s5 = int_to_ptr.vmem [resolvable:$true] %s313_s5 }
  0x3c   : > { %v175_v7 = vld [vmem:[%s685_s6 + $0x28] sm:$0xff]  ;;  %v176_v8 = vld [vmem:[%s685_s6 + $0x30] sm:$0xff]  ;;  %v177_v9 = vld [vmem:[%s685_s6 + $0x38] sm:$0xff]  ;;  %s820_s8 = scalar_lea.hbm %s879_s2, %s401_s4  ;;  %s300_s9 = scalar_lea.sflag [#allocation5], %s679_s27 }
  0x3d   : > { %v178_v16 = vld [vmem:[%s685_s6 + $0x40] sm:$0xff]  ;;  %v179_v17 = vld [vmem:[%s685_s6 + $0x48] sm:$0xff]  ;;  %v180_v22 = vld [vmem:[%s685_s6 + $0x50] sm:$0xff]  ;;  %s484_s10 = scalar_lea.vmem %s822_s5, 4096  ;;  %p886_p10 = scmp.ne.s32.totalorder %s883_s22, 0 }
  0x3e   : > { %v181_v23 = vld [vmem:[%s685_s6 + $0x58] sm:$0xff]  ;;  %v182_v24 = vld [vmem:[%s685_s6 + $0x60] sm:$0xff]  ;;  %v183_v29 = vld [vmem:[%s685_s6 + $0x68] sm:$0xff]  ;;  %p485_p6 = scmp.ne.s32.totalorder %s822_s5, %s484_s10  ;;  %s555_s15 = smov [#allocation6]  }
  0x3f   : > { %v184_v30 = vld [vmem:[%s685_s6 + $0x70] sm:$0xff]  ;;  %v185_v31 = vld [vmem:[%s685_s6 + $0x78] sm:$0xff]  ;;  %v186_v40 = vld [vmem:[%s685_s6 + $0x80] sm:$0xff]  ;;  %s488_s17 = sshll.u32 %s555_s15, 4  ;;  %s489_s17 = int_to_ptr.vmem [resolvable:$false] %s488_s17 }
  0x40   : > { %s166_s3 = ssub.f32 0.0, %s165_s29  ;;  %v701_v11 = vstv %s165_s29  ;;  %v187_v41 = vld [vmem:[%s685_s6 + $0x88] sm:$0xff]  ;;  %v188_v46 = vld [vmem:[%s685_s6 + $0x90] sm:$0xff]  ;;  %v189_v47 = vld [vmem:[%s685_s6 + $0x98] sm:$0xff]  ;;  %p486_p11 = pnand %p485_p6, %p886_p10 }
  0x41   : > { %v190_v48 = vld [vmem:[%s685_s6 + $0xa0] sm:$0xff]  ;;  %v191_v53 = vld [vmem:[%s685_s6 + $0xa8] sm:$0xff]  ;;  %v192_v54 = vld [vmem:[%s685_s6 + $0xb0] sm:$0xff]  ;;  %s490_s18 = scalar_lea.vmem %s489_s17, 8192  ;;  %p491_p8 = scmp.lt.s32.totalorder %s822_s5, %s489_s17 }
  0x42   : > { %v167_v0 = vstv %s166_s3  ;;  %v193_v55 = vld [vmem:[%s685_s6 + $0xb8] sm:$0xff]  ;;  %p487_p12 = pneg %p486_p11  ;;  %p492_p9 = scmp.lt.s32.totalorder %s490_s18, %s484_s10 }
  0x43   : > { %v168_v1 = vmul.f32 1.442695, %v167_v0  ;;  %v194_v0 = vld [vmem:[%s685_s6 + $0xc0] sm:$0xff] }
  0x44   : > { %p493_p13 = por %p492_p9, %p491_p8 }
  0x45   : > { %452 = vpow2.f32 %v168_v1  ;;  %v195_v1 = vld [vmem:[%s685_s6 + $0xc8] sm:$0xff] }
  0x46   : > { %p494_p1 = pnand %p493_p13, %p487_p12 }
  0x4f   : > { %v699_v10 = vpop.eup %452 }
  0x50   : > { %v202_v12 = vmul.f32 %v699_v10, %v170_v2  ;;  %v203_v13 = vmul.f32 %v699_v10, %v171_v3  ;;  %v204_v14 = vmul.f32 %v699_v10, %v172_v4  ;;  %v205_v15 = vmul.f32 %v699_v10, %v173_v5 }
  0x51   : > { %v206_v18 = vmul.f32 %v699_v10, %v174_v6  ;;  %v207_v19 = vmul.f32 %v699_v10, %v175_v7  ;;  %v208_v20 = vmul.f32 %v699_v10, %v176_v8  ;;  %v209_v21 = vmul.f32 %v699_v10, %v177_v9  ;;  %v196_v6 = vld [vmem:[%s685_s6 + $0xd0] sm:$0xff]  ;;  %v197_v7 = vld [vmem:[%s685_s6 + $0xd8] sm:$0xff]  ;;  %v198_v8 = vld [vmem:[%s685_s6 + $0xe0] sm:$0xff] }
  0x52   : > { %v235_v25 = vadd.f32 %v701_v11, %v202_v12  ;;  %v236_v26 = vadd.f32 %v701_v11, %v203_v13  ;;  %v237_v27 = vadd.f32 %v701_v11, %v204_v14  ;;  %v238_v28 = vadd.f32 %v701_v11, %v205_v15  ;;  %v199_v15 = vld [vmem:[%s685_s6 + $0xe8] sm:$0xff] }
  0x53   : > { %v239_v32 = vadd.f32 %v701_v11, %v206_v18  ;;  %v240_v33 = vadd.f32 %v701_v11, %v207_v19  ;;  %v241_v34 = vadd.f32 %v701_v11, %v208_v20  ;;  %v242_v35 = vadd.f32 %v701_v11, %v209_v21 }
  0x54   : > { %267 = vst [vmem:[%s729_s21] sm:$0xff] %v235_v25  ;;  %268 = vst [vmem:[%s729_s21 + $0x8] sm:$0xff] %v236_v26  ;;  %v210_v36 = vmul.f32 %v699_v10, %v178_v16  ;;  %v211_v37 = vmul.f32 %v699_v10, %v179_v17  ;;  %v212_v38 = vmul.f32 %v699_v10, %v180_v22  ;;  %v200_v16 = vld [vmem:[%s685_s6 + $0xf0] sm:$0xff]  ;;  %v201_v17 = vld [vmem:[%s685_s6 + $0xf8] sm:$0xff] }
  0x55   : > { %269 = vst [vmem:[%s729_s21 + $0x10] sm:$0xff] %v237_v27  ;;  %270 = vst [vmem:[%s729_s21 + $0x18] sm:$0xff] %v238_v28  ;;  %v213_v39 = vmul.f32 %v699_v10, %v181_v23  ;;  %v214_v42 = vmul.f32 %v699_v10, %v182_v24  ;;  %v215_v43 = vmul.f32 %v699_v10, %v183_v29 }
  0x56   : > { %271 = vst [vmem:[%s729_s21 + $0x20] sm:$0xff] %v239_v32  ;;  %272 = vst [vmem:[%s729_s21 + $0x28] sm:$0xff] %v240_v33  ;;  %v216_v44 = vmul.f32 %v699_v10, %v184_v30  ;;  %v217_v45 = vmul.f32 %v699_v10, %v185_v31  ;;  %v243_v49 = vadd.f32 %v701_v11, %v210_v36 }
  0x57   : > { %273 = vst [vmem:[%s729_s21 + $0x30] sm:$0xff] %v241_v34  ;;  %274 = vst [vmem:[%s729_s21 + $0x38] sm:$0xff] %v242_v35  ;;  %v244_v50 = vadd.f32 %v701_v11, %v211_v37  ;;  %v245_v51 = vadd.f32 %v701_v11, %v212_v38  ;;  %v246_v52 = vadd.f32 %v701_v11, %v213_v39 }
  0x58   : > { %v247_v56 = vadd.f32 %v701_v11, %v214_v42  ;;  %v248_v57 = vadd.f32 %v701_v11, %v215_v43  ;;  %v249_v58 = vadd.f32 %v701_v11, %v216_v44  ;;  %v250_v59 = vadd.f32 %v701_v11, %v217_v45  ;;  %275 = vst [vmem:[%s729_s21 + $0x40] sm:$0xff] %v243_v49 }
  0x59   : > { %276 = vst [vmem:[%s729_s21 + $0x48] sm:$0xff] %v244_v50  ;;  %277 = vst [vmem:[%s729_s21 + $0x50] sm:$0xff] %v245_v51  ;;  %v218_v60 = vmul.f32 %v699_v10, %v186_v40  ;;  %v219_v61 = vmul.f32 %v699_v10, %v187_v41  ;;  %v220_v62 = vmul.f32 %v699_v10, %v188_v46 }
  0x5a   : > { %278 = vst [vmem:[%s729_s21 + $0x58] sm:$0xff] %v246_v52  ;;  %v221_v63 = vmul.f32 %v699_v10, %v189_v47  ;;  %279 = vst [vmem:[%s729_s21 + $0x60] sm:$0xff] %v247_v56  ;;  %v222_v2 = vmul.f32 %v699_v10, %v190_v48  ;;  %v223_v3 = vmul.f32 %v699_v10, %v191_v53 }
  0x5b   : > { %280 = vst [vmem:[%s729_s21 + $0x68] sm:$0xff] %v248_v57  ;;  %281 = vst [vmem:[%s729_s21 + $0x70] sm:$0xff] %v249_v58  ;;  %v224_v4 = vmul.f32 %v699_v10, %v192_v54  ;;  %v225_v5 = vmul.f32 %v699_v10, %v193_v55  ;;  %v251_v9 = vadd.f32 %v701_v11, %v218_v60 }
  0x5c   : > { %282 = vst [vmem:[%s729_s21 + $0x78] sm:$0xff] %v250_v59  ;;  %v252_v12 = vadd.f32 %v701_v11, %v219_v61  ;;  %v253_v13 = vadd.f32 %v701_v11, %v220_v62  ;;  %v254_v14 = vadd.f32 %v701_v11, %v221_v63  ;;  %v255_v18 = vadd.f32 %v701_v11, %v222_v2 }
  0x5d   : > { %v256_v19 = vadd.f32 %v701_v11, %v223_v3  ;;  %v257_v20 = vadd.f32 %v701_v11, %v224_v4  ;;  %v258_v21 = vadd.f32 %v701_v11, %v225_v5  ;;  %283 = vst [vmem:[%s729_s21 + $0x80] sm:$0xff] %v251_v9  ;;  %v226_v22 = vmul.f32 %v699_v10, %v194_v0 }
  0x5e   : > { %284 = vst [vmem:[%s729_s21 + $0x88] sm:$0xff] %v252_v12  ;;  %285 = vst [vmem:[%s729_s21 + $0x90] sm:$0xff] %v253_v13  ;;  %v227_v23 = vmul.f32 %v699_v10, %v195_v1  ;;  %v228_v24 = vmul.f32 %v699_v10, %v196_v6  ;;  %v229_v25 = vmul.f32 %v699_v10, %v197_v7 }
  0x5f   : > { %286 = vst [vmem:[%s729_s21 + $0x98] sm:$0xff] %v254_v14  ;;  %287 = vst [vmem:[%s729_s21 + $0xa0] sm:$0xff] %v255_v18  ;;  %v230_v26 = vmul.f32 %v699_v10, %v198_v8  ;;  %v231_v27 = vmul.f32 %v699_v10, %v199_v15  ;;  %v232_v28 = vmul.f32 %v699_v10, %v200_v16 }
  0x60   : > { %288 = vst [vmem:[%s729_s21 + $0xa8] sm:$0xff] %v256_v19  ;;  %289 = vst [vmem:[%s729_s21 + $0xb0] sm:$0xff] %v257_v20  ;;  %v233_v29 = vmul.f32 %v699_v10, %v201_v17  ;;  %v259_v30 = vadd.f32 %v701_v11, %v226_v22  ;;  %v260_v31 = vadd.f32 %v701_v11, %v227_v23 }
  0x61   : > { %290 = vst [vmem:[%s729_s21 + $0xb8] sm:$0xff] %v258_v21  ;;  %v261_v32 = vadd.f32 %v701_v11, %v228_v24  ;;  %v262_v33 = vadd.f32 %v701_v11, %v229_v25  ;;  %v263_v10 = vadd.f32 %v701_v11, %v230_v26  ;;  %v264_v34 = vadd.f32 %v701_v11, %v231_v27 }
  0x62   : > { %v265_v35 = vadd.f32 %v701_v11, %v232_v28  ;;  %v266_v36 = vadd.f32 %v701_v11, %v233_v29  ;;  %291 = vst [vmem:[%s729_s21 + $0xc0] sm:$0xff] %v259_v30  ;;  %292 = vst [vmem:[%s729_s21 + $0xc8] sm:$0xff] %v260_v31 }
  0x63   : > { %293 = vst [vmem:[%s729_s21 + $0xd0] sm:$0xff] %v261_v32  ;;  %294 = vst [vmem:[%s729_s21 + $0xd8] sm:$0xff] %v262_v33 }
  0x64   : > { %295 = vst [vmem:[%s729_s21 + $0xe0] sm:$0xff] %v263_v10  ;;  %296 = vst [vmem:[%s729_s21 + $0xe8] sm:$0xff] %v264_v34 }
  0x65   : > { %297 = vst [vmem:[%s729_s21 + $0xf0] sm:$0xff] %v265_v35  ;;  %298 = vst [vmem:[%s729_s21 + $0xf8] sm:$0xff] %v266_v36 }
  0x66   : > { %497 = shalt.err (!%p494_p1)
}
  0x67   : > { %s498_s20 = scalar_lea.hbm %s820_s8, 4096  ;;  %s502_s26 = scalar_lea.hbm %s879_s2, 16384 }
  0x68   : > { %p499_p3 = scmp.ne.s32.totalorder %s820_s8, %s498_s20  ;;  %p503_p0 = scmp.lt.u32.totalorder %s820_s8, %s879_s2 }
  0x69   : > { %p504_p2 = scmp.lt.u32.totalorder %s502_s26, %s498_s20  ;;  %p506_p6 = scmp.lt.u32.totalorder %s498_s20, %s820_s8 }
  0x6a   : > { %p500_p4 = pnand %p499_p3, %p886_p10 }
  0x6b   : > { %p505_p7 = por %p504_p2, %p503_p0 }
  0x6c   : > { %p501_p5 = pneg %p500_p4 }
  0x6d   : > { %p507_p11 = por %p506_p6, %p505_p7 }
  0x6f   : > { %p508_p12 = pnand %p507_p11, %p501_p5 }
  0x71   : > { %511 = shalt.err (!%p508_p12)
}
  0x72   : > { %s556_s6 = smov 128   ;;  %s557_s29 = smov 8  }
  0x73   : > { %404 = dma.vmem_to_hbm [thread:$0]  (%p886_p10), %s822_s5, 4096, %s820_s8, %s300_s9, %s556_s6, %s556_s6, %s557_s29  }
  0x74 PF: > { %p415_p8 = scmp.ge.s32.totalorder %s550_s14, 2  ;;  %s328_s3 = sand.u32 1, %s538_s11  }
  0x75   : > { %p887_p9 = scmp.ne.s32.totalorder %s884_s23, 0  ;;  %s329_s21 = scalar_lea.sflag [#allocation5], %s328_s3 }
  0x77   : > { %p411_p13 = pnand %p415_p8, %p887_p9 }
  0x79   : > { %533 = dma.done.wait (!%p411_p13), %s329_s21, 4096  }
  0x7a   : > { %535 = vsyncadd (!%p411_p13), %s329_s21, 4294963200  ;;  %p16_p1 = scmp.ge.s32.totalorder %s601_s16, 6   ;;  %s888_s11 = smov %s542_s12 }
  0x7b   : > { %s889_s12 = smov %s546_s13  ;;  %s890_s13 = smov %s613_s19 }
  0x7c   : > { %s891_s14 = smov %s601_s16  ;;  %18 = sbr.rel (!%p16_p1) target bundleno = 7 (0x7), region = 73 }
  0x83   :  { %334 = vsyncpa [#allocation4], 1 }
  0x84   :  { %336 = vsyncpa [#allocation4 + $0x1], 1 }
  0x85   :  { %337 = vsyncpa [#allocation5], 1 }
  0x86   :  { %339 = vsyncpa [#allocation5 + $0x1], 1 }

</bundles_post_ra>
